<compile_context>
chip_gen: v7x
topology: tpu7x:2x2x1
jax: 0.10.0
libtpu: 0.0.40
codegen_flags: <defaults>
</compile_context>

<pallas_src>
import functools

import jax
import jax.numpy as jnp
from jax import lax
from jax.experimental import pallas as pl
from jax.experimental.pallas import tpu as pltpu

LANES = 128
_WIDTHS = (8192, 4096, 2048, 1024, 512, 256, 128)
_TARGET_BLOCK_BYTES = 2 * 1024 * 1024   # ~2 MiB per block (dtype-independent)
_MIN_GRID_STEPS = 8                     # keep pipeline deep / feed both v7x TCs
_VMEM_LIMIT_BYTES = 32 * 1024 * 1024    # safe on v5e/v6e (128 MiB) and v7x (64 MiB)


def _cdiv(a, b):
    return -(-a // b)


def _mlu_kernel(x_ref, o_ref, *, min_val, inv_min_val, fused, compute_dtype):
    x = x_ref[...].astype(compute_dtype)
    if fused:
        # min_val > 0  =>  sign(leaky_relu(x, 1/min_val)) == sign(x), so the
        # two compares/selects collapse into one; exp goes to the EUP slot
        # (free for this mem-bound kernel).
        out = jnp.where(x >= 0, x, min_val * (jnp.exp(x * inv_min_val) - 1.0))
    else:
        # General two-step form (handles negative min_val).
        y = jnp.where(x >= 0, x, x * inv_min_val)
        out = jnp.where(y > 0, y, min_val * (jnp.exp(y) - 1.0))
    o_ref[...] = out.astype(o_ref.dtype)


def _compute_dtype(dtype):
    """bf16-native compute on v6e/v7x; f32 upcast elsewhere / for other dtypes."""
    if jnp.dtype(dtype) == jnp.dtype(jnp.bfloat16):
        try:
            kind = jax.devices()[0].device_kind.lower()
        except Exception:
            kind = ""
        if not any(v in kind for v in ("v2", "v3", "v4", "v5")):
            return jnp.bfloat16
    return jnp.float32


def _choose_width(n):
    """Pick slab width (multiple of 128). Returns (w, exact).

    Prefers a wide exact divisor (no tail at all); for awkward sizes uses a
    fixed wide width and lets the caller peel off a < w element tail instead
    of degrading to a narrow slab or paying full pad/slice passes.
    """
    for w in _WIDTHS[:4]:                    # 8192..1024: wide, take exact fit
        if n % w == 0:
            return w, True
    for w in _WIDTHS[4:]:                    # 512..128: exact only if slab small
        if n % w == 0 and n // w <= 64:
            return w, True
    for w in _WIDTHS:                        # awkward size: wide slab + tiny tail
        if n >= w:
            return w, False
    return LANES, False                      # n < 128 handled by pure-jnp path


def _block_rows_for(rows, w, itemsize):
    """Block rows: ~_TARGET_BLOCK_BYTES, sublane-rounded, grid kept deep & even."""
    sublane = max(8, 32 // max(1, itemsize))         # 8 f32, 16 bf16, 32 int8/fp8
    tgt = max(1, _TARGET_BLOCK_BYTES // (w * itemsize))
    br = max(sublane, (tgt // sublane) * sublane)
    # Keep >= _MIN_GRID_STEPS grid steps so load/compute/store pipeline and
    # v7x's two TensorCores both get work.
    depth_cap = max(sublane, (_cdiv(rows, _MIN_GRID_STEPS) // sublane) * sublane)
    br = min(br, depth_cap)
    if br >= rows:
        return rows                                   # full extent: always legal
    # Prefer an even number of grid steps (v7x: 2 TCs share the grid).
    steps = _cdiv(rows, br)
    if steps % 2 == 1 and br > sublane:
        alt = br - sublane
        if _cdiv(rows, alt) % 2 == 0:
            br = alt
    return br


def _mlu_jnp(x, min_val):
    """Pure-JAX MLU (used for < 128-element arrays and the tiny ragged tail)."""
    xf = x.astype(jnp.float32)
    y = jnp.where(xf >= 0.0, xf, xf / min_val)
    out = jnp.where(y > 0.0, y, min_val * (jnp.exp(y) - 1.0))
    return out.astype(x.dtype)


def mlu(x, min_val):
    """Apply MLU elementwise to an arbitrarily-shaped array."""
    min_val = float(min_val)
    if min_val == 0.0:
        raise ValueError("MLU requires min_val != 0 (leaky slope is 1/min_val).")

    orig_shape, orig_dtype = x.shape, x.dtype
    n = x.size
    if n == 0:
        return x
    flat = jnp.ravel(x)                       # contiguous -> bitcast, no copy

    if n < LANES:
        return _mlu_jnp(flat, min_val).reshape(orig_shape)

    w, exact = _choose_width(n)
    itemsize = jnp.dtype(orig_dtype).itemsize
    n_main = n if exact else (n // w) * w
    rows = n_main // w
    block_rows = _block_rows_for(rows, w, itemsize)

    main = flat if exact else lax.slice(flat, (0,), (n_main,))
    slab = main.reshape(rows, w)

    kernel = functools.partial(
        _mlu_kernel,
        min_val=min_val,
        inv_min_val=1.0 / min_val,
        fused=min_val > 0.0,
        compute_dtype=_compute_dtype(orig_dtype),
    )

    out_slab = pl.pallas_call(
        kernel,
        out_shape=jax.ShapeDtypeStruct((rows, w), orig_dtype),
        grid_spec=pltpu.PrefetchScalarGridSpec(
            num_scalar_prefetch=0,
            grid=(_cdiv(rows, block_rows),),
            in_specs=[pl.BlockSpec((block_rows, w), lambda i: (i, 0))],
            out_specs=pl.BlockSpec((block_rows, w), lambda i: (i, 0)),
        ),
        compiler_params=pltpu.CompilerParams(
            dimension_semantics=("parallel",),
            vmem_limit_bytes=_VMEM_LIMIT_BYTES,
        ),
        cost_estimate=pl.CostEstimate(
            flops=5 * n_main,
            transcendentals=n_main,
            bytes_accessed=2 * n_main * itemsize,
        ),
    )(slab)

    out_flat = out_slab.reshape(-1)
    if not exact:
        # Tiny (< w element) tail: compute outside the kernel, MLU(0)-free.
        tail = lax.slice(flat, (n_main,), (n,))
        out_flat = jnp.concatenate([out_flat, _mlu_jnp(tail, min_val)])
    return out_flat.reshape(orig_shape)


def _mlu_ref(x, min_val):
    """Pure-JAX reference (two-step leaky_relu + elu, matches PyTorch)."""
    xf = x.astype(jnp.float32)
    y = jnp.where(xf >= 0.0, xf, xf / min_val)
    out = jnp.where(y > 0.0, y, min_val * (jnp.exp(y) - 1.0))
    return out.astype(x.dtype)


if __name__ == "__main__":
    key = jax.random.PRNGKey(0)
    min_val = 0.2  # MLU(min_val=0.2): leaky slope = 5.0, elu alpha = 0.2

    # Main NCHW test (aligned: exact wide slab, no tail path).
    x = jax.random.normal(key, (2, 4, 16, 16), dtype=jnp.float32) * 3.0
    out = jax.block_until_ready(mlu(x, min_val))
    ref = _mlu_ref(x, min_val)
    assert out.shape == x.shape and out.dtype == x.dtype
    assert jnp.allclose(out, ref, atol=1e-5, rtol=1e-5)

    # Ragged-size test (exercises aligned-prefix kernel + tiny jnp tail).
    x2 = jax.random.normal(jax.random.PRNGKey(1), (3, 5, 7, 11),
                           dtype=jnp.float32) * 3.0
    out2 = jax.block_until_ready(mlu(x2, min_val))
    ref2 = _mlu_ref(x2, min_val)
    assert out2.shape == x2.shape and out2.dtype == x2.dtype
    assert jnp.allclose(out2, ref2, atol=1e-5, rtol=1e-5)

    # bf16 test (exercises dtype-aware sublane rounding and, on v6e/v7x,
    # native bf16 compute).
    x3 = (jax.random.normal(jax.random.PRNGKey(2), (2, 4, 16, 16),
                            dtype=jnp.float32) * 3.0).astype(jnp.bfloat16)
    out3 = jax.block_until_ready(mlu(x3, min_val))
    ref3 = _mlu_ref(x3, min_val)
    assert out3.shape == x3.shape and out3.dtype == x3.dtype
    assert jnp.allclose(out3.astype(jnp.float32), ref3.astype(jnp.float32),
                        atol=3e-2, rtol=3e-2)

    print("KERNEL_OK")
</pallas_src>

<mosaic_0001>
module attributes {stable_mosaic.version = 11 : i64} {
  func.func @_mlu_kernel(%arg0: i32, %arg1: memref<1x2048xf32, #tpu.memory_space<vmem>>, %arg2: memref<1x2048xf32, #tpu.memory_space<vmem>>) attributes {dimension_semantics = [#tpu.dimension_semantics<parallel>], iteration_bounds = array<i64: 1>, scalar_prefetch = 0 : i64, scratch_operands = 0 : i64, tpu.core_type = #tpu.core_type<tc>, window_params = [{transform_indices = @transform_0, window_bounds = array<i64: 1, 2048>}, {transform_indices = @transform_1, window_bounds = array<i64: 1, 2048>}]} {
    %c0 = arith.constant 0 : index
    %c0_0 = arith.constant 0 : index
    %0 = vector.load %arg1[%c0, %c0_0] : memref<1x2048xf32, #tpu.memory_space<vmem>>, vector<1x2048xf32>
    %cst = arith.constant 0.000000e+00 : f32
    %1 = vector.broadcast %cst : f32 to vector<1x2048xf32>
    %2 = arith.cmpf oge, %0, %1 : vector<1x2048xf32>
    %cst_1 = arith.constant 5.000000e+00 : f32
    %3 = vector.broadcast %cst_1 : f32 to vector<1x2048xf32>
    %4 = arith.mulf %0, %3 : vector<1x2048xf32>
    %5 = math.exp %4 : vector<1x2048xf32>
    %cst_2 = arith.constant 1.000000e+00 : f32
    %6 = vector.broadcast %cst_2 : f32 to vector<1x2048xf32>
    %7 = arith.subf %5, %6 : vector<1x2048xf32>
    %cst_3 = arith.constant 2.000000e-01 : f32
    %8 = vector.broadcast %cst_3 : f32 to vector<1x2048xf32>
    %9 = arith.mulf %8, %7 : vector<1x2048xf32>
    %10 = arith.select %2, %0, %9 : vector<1x2048xi1>, vector<1x2048xf32>
    %c0_4 = arith.constant 0 : index
    %c0_5 = arith.constant 0 : index
    %11 = vector.load %arg2[%c0_4, %c0_5] : memref<1x2048xf32, #tpu.memory_space<vmem>>, vector<1x2048xf32>
    tpu.vector_store %arg2[%c0_4, %c0_5], %10 {strides = array<i32>} : memref<1x2048xf32, #tpu.memory_space<vmem>>, vector<1x2048xf32>,
    return
  }
  func.func @transform_0(%arg0: i32) -> (i32, i32) {
    %c0_i32 = arith.constant 0 : i32
    %c0_i32_0 = arith.constant 0 : i32
    return %arg0, %c0_i32 : i32, i32
  }
  func.func @transform_1(%arg0: i32) -> (i32, i32) {
    %c0_i32 = arith.constant 0 : i32
    %c0_i32_0 = arith.constant 0 : i32
    return %arg0, %c0_i32 : i32, i32
  }
}

</mosaic_0001>

<bundles_post_ra>
// kernel: tpu_custom_call.1
= control target key start
LH: loop header
LB: loop body
LE: loop exit
PB: predicated region body
PF: predicated region fallthrough
CT: control target
= control target key end

     0   :  { %6 = vsyncpa [#allocation3], 0  ;;  %s146_s0 = inlined_call_operand.hbm [shape: f32[1,2048], index: 0, kind: input, shape index: {}]   ;;  %s147_s1 = inlined_call_operand.hbm [shape: f32[1,2048], index: 1, kind: output, shape index: {}]  }
   0x1   :  { %7 = vsyncpa [#allocation4], 0  ;;  %s110_s6 = smov [#allocation2]   ;;  %s62_s10 = scalar_lea.hbm %s146_s0, 256 }
   0x2   :  { %s14_s7 = sshll.u32 %s110_s6, 4  ;;  %p63_p0 = scmp.ne.s32.totalorder %s146_s0, %s62_s10  ;;  %s15_s7 = int_to_ptr.vmem [resolvable:$true] %s14_s7 }
   0x3   :  { %p66_p1 = scmp.lt.u32.totalorder %s62_s10, %s146_s0 }
   0x5   :  { %p68_p2 = pnand %p66_p1, %p63_p0 }
   0x7   :  { %71 = shalt.err (!%p68_p2)
}
   0x8   :  { %s72_s15 = scalar_lea.vmem %s15_s7, 256  ;;  %p77_p4 = scmp.lt.s32.totalorder %s15_s7, %s15_s7 }
   0x9   :  { %p73_p3 = scmp.ne.s32.totalorder %s15_s7, %s72_s15  ;;  %p78_p5 = scmp.lt.s32.totalorder %s72_s15, %s72_s15 }
   0xb   :  { %p79_p6 = por %p78_p5, %p77_p4 }
   0xd   :  { %p80_p7 = pnand %p79_p6, %p73_p3 }
   0xf   :  { %83 = shalt.err (!%p80_p7)
}
  0x10   :  { %17 = dma.hbm_to_vmem [thread:$0]  %s146_s0, 256, %s15_s7, [#allocation3]  }
  0x11   :  { %106 = dma.done.wait [#allocation3], 256  }
  0x12   :  { %107 = vsyncadd [#allocation3], 4294967040  ;;  %v21_v0 = vld [vmem:[#allocation2] sm:$0xff]  ;;  %v22_v1 = vld [vmem:[#allocation2 + $0x8] sm:$0xff]  ;;  %s111_s18 = smov [#allocation5]  }
  0x13   :  { %v25_v2 = vmul.f32 5.0, %v21_v0  ;;  %v26_v3 = vmul.f32 5.0, %v22_v1  ;;  %vm23_vm0 = vcmp.ge.f32.partialorder %v21_v0, 0.0  ;;  %s45_s19 = sshll.u32 %s111_s18, 4  ;;  %vm24_vm1 = vcmp.ge.f32.partialorder %v22_v1, 0.0  ;;  %s46_s19 = int_to_ptr.vmem [resolvable:$true] %s45_s19 }
  0x14   :  { %s84_s0 = scalar_lea.vmem %s46_s19, 256  ;;  %p89_p9 = scmp.lt.s32.totalorder %s46_s19, %s46_s19 }
  0x15   :  { %v27_v4 = vmul.f32 1.442695, %v25_v2  ;;  %v29_v5 = vmul.f32 1.442695, %v26_v3  ;;  %p85_p8 = scmp.ne.s32.totalorder %s46_s19, %s84_s0  ;;  %p90_p10 = scmp.lt.s32.totalorder %s84_s0, %s84_s0 }
  0x17   :  { %58 = vpow2.f32 %v27_v4  ;;  %p91_p11 = por %p90_p10, %p89_p9 }
  0x18   :  { %60 = vpow2.f32 %v29_v5 }
  0x19   :  { %p92_p12 = pnand %p91_p11, %p85_p8 }
  0x21   :  { %v59_v6 = vpop.eup %58 }
  0x22   :  { %v61_v7 = vpop.eup %60  ;;  %v54_v8 = vadd.f32 -1.0, %v59_v6 }
  0x23   :  { %v55_v9 = vadd.f32 -1.0, %v61_v7 }
  0x24   :  { %v33_v10 = vmul.f32 0.2, %v54_v8 }
  0x25   :  { %v34_v11 = vmul.f32 0.2, %v55_v9 }
  0x26   :  { %v35_v12 = vsel %vm23_vm0, %v21_v0, %v33_v10 }
  0x27   :  { %37 = vst [vmem:[#allocation5] sm:$0xff] %v35_v12  ;;  %v36_v13 = vsel %vm24_vm1, %v22_v1, %v34_v11 }
  0x28   :  { %38 = vst [vmem:[#allocation5 + $0x8] sm:$0xff] %v36_v13 }
  0x29   :  { %95 = shalt.err (!%p92_p12)
}
  0x2a   :  { %s96_s22 = scalar_lea.hbm %s147_s1, 256 }
  0x2b   :  { %p97_p13 = scmp.ne.s32.totalorder %s147_s1, %s96_s22  ;;  %p100_p0 = scmp.lt.u32.totalorder %s96_s22, %s147_s1 }
  0x2d   :  { %p102_p1 = pnand %p100_p0, %p97_p13 }
  0x2f   :  { %105 = shalt.err (!%p102_p1)
}
  0x30   :  { %48 = dma.vmem_to_hbm [thread:$0]  %s46_s19, 256, %s147_s1, [#allocation4]  }
  0x31   :  { %108 = dma.done.wait [#allocation4], 256  }
  0x32   :  { %109 = vsyncadd [#allocation4], 4294967040 }
  0x33   :  { %52 = vsyncpa [#allocation3], 1 }
  0x34   :  { %53 = vsyncpa [#allocation4], 1 }

</bundles_post_ra>
